<compile_context>
chip_gen: v5e
topology: v5e:2x2
jax: 0.10.0
libtpu: 0.0.40
codegen_flags: <defaults>
</compile_context>

<pallas_src>
import functools

import jax
import jax.numpy as jnp
from jax.experimental import pallas as pl
from jax.experimental.pallas import tpu as pltpu


# ---------------------------------------------------------------------------
# Channels-first linear kernel (qkv / proj GEMMs)
# ---------------------------------------------------------------------------
def _cf_linear_kernel(x_ref, w_ref, b_ref, o_ref):
    # x_ref (1, Cin, TN), w_ref (Cout, Cin), b_ref (Cout, 1), o_ref (1, Cout, TN)
    # bf16 MXU operands (cast in-kernel -> hidden under the MXU), f32 accumulate.
    xb = x_ref[0].astype(jnp.bfloat16)
    wb = w_ref[...].astype(jnp.bfloat16)
    y = jnp.dot(wb, xb, preferred_element_type=jnp.float32)
    o_ref[0] = (y + b_ref[...]).astype(o_ref.dtype)


def _pick_tile(n, target=1024):
    """Largest lane tile <= target that divides n and is a multiple of 128
    (or n itself if n is small / has no such divisor)."""
    if n <= target:
        return n
    t = (target // 128) * 128
    while t >= 128:
        if n % t == 0:
            return t
        t -= 128
    return n


def pallas_cf_linear(x, w_t, b, *, out_dtype=jnp.float32, tile_target=1024):
    """Channels-first linear: out[b, :, p] = w_t @ x[b, :, p] + b.

    x: (B, Cin, N) (any float dtype), w_t: (Cout, Cin), b: (Cout,).
    """
    B, cin, n = x.shape
    cout = w_t.shape[0]
    tn = _pick_tile(n, tile_target)
    b2 = b.reshape(cout, 1).astype(jnp.float32)
    return pl.pallas_call(
        _cf_linear_kernel,
        out_shape=jax.ShapeDtypeStruct((B, cout, n), out_dtype),
        grid=(B, n // tn),
        in_specs=[
            pl.BlockSpec((1, cin, tn), lambda i, j: (i, 0, j)),
            pl.BlockSpec((cout, cin), lambda i, j: (0, 0)),
            pl.BlockSpec((cout, 1), lambda i, j: (0, 0)),
        ],
        out_specs=pl.BlockSpec((1, cout, tn), lambda i, j: (i, 0, j)),
        compiler_params=pltpu.CompilerParams(
            dimension_semantics=("parallel", "parallel")),
    )(x, w_t, b2)


# ---------------------------------------------------------------------------
# Slide attention kernel (per batch*head block)
# ---------------------------------------------------------------------------
def _slide_attn_kernel(qkv_ref, w1_ref, kb_ref, vb_ref, o_ref, *, H, W, ka):
    # qkv_ref : (1, 3, cph, HW)  bf16 (q scale already folded into qkv weight)
    # w1_ref  : (cph, ka2*ka2)   f32  effective tap-mix weight (identity + dep_conv1)
    # kb_ref  : (1, ka2, cph, 1) f32  dep biases + per-head rpb
    # vb_ref  : (ka2, cph, 1)    f32  dep biases
    # o_ref   : (1, cph, HW)
    cph = o_ref.shape[1]
    hw = o_ref.shape[2]
    ka2 = ka * ka
    pad = ka // 2

    # VPU math stays f32 (v5e has no bf16 VALU); cast only at the boundaries.
    q = qkv_ref[0, 0].astype(jnp.float32)                  # (cph, hw)
    k = qkv_ref[0, 1].astype(jnp.float32)
    v = qkv_ref[0, 2].astype(jnp.float32)
    w1 = w1_ref[...]                                       # (cph, ka2*ka2)

    # Boundary masks / roll shifts for the ka^2 taps (hoisted, shared k & v).
    pos = jax.lax.broadcasted_iota(jnp.int32, (1, hw), 1)
    py = pos // W
    px = pos % W
    masks, shifts = [], []
    for dy in range(ka):
        for dx in range(ka):
            oy, ox = dy - pad, dx - pad
            valid = ((py + oy >= 0) & (py + oy < H) &
                     (px + ox >= 0) & (px + ox < W))       # (1, hw)
            masks.append(valid)
            shifts.append((-(oy * W + ox)) % hw)

    def taps(x2):
        # (cph, hw) -> list of ka2 zero-padded shifted copies (the fixed
        # identity-shift dep_conv; biases handled separately).
        rows = []
        for t in range(ka2):
            r = x2 if shifts[t] == 0 else pltpu.roll(x2, shift=shifts[t], axis=1)
            rows.append(jnp.where(masks[t], r, 0.0))
        return rows

    def col(t, j):                                         # per-channel (cph, 1)
        i = t * ka2 + j
        return w1[:, i:i + 1]

    # ---- k path: logits[t] = sum_c q * (sum_j w1[:,t,j]*Tk[j] + kbias[:,t]) ----
    tk = taps(k)
    logit_rows = []
    for t in range(ka2):
        kf_t = col(t, 0) * tk[0] + kb_ref[0, t]            # (cph, hw)
        for j in range(1, ka2):
            kf_t = kf_t + col(t, j) * tk[j]
        logit_rows.append(jnp.sum(q * kf_t, axis=0, keepdims=True))  # (1, hw)

    # softmax over the ka*ka window, kept as per-tap rows (no relayout)
    m = logit_rows[0]
    for t in range(1, ka2):
        m = jnp.maximum(m, logit_rows[t])
    e_rows = [jnp.exp(r - m) for r in logit_rows]
    denom = e_rows[0]
    for t in range(1, ka2):
        denom = denom + e_rows[t]
    inv = pl.reciprocal(denom, approx=True)                # EUP
    p_rows = [e * inv for e in e_rows]                     # ka2 x (1, hw)

    # ---- v path (after softmax to bound live ranges) ----
    tv = taps(v)
    acc = jnp.zeros((cph, hw), jnp.float32)
    for t in range(ka2):
        vf_t = col(t, 0) * tv[0] + vb_ref[t]
        for j in range(1, ka2):
            vf_t = vf_t + col(t, j) * tv[j]
        acc = acc + p_rows[t] * vf_t
    o_ref[0] = acc.astype(o_ref.dtype)                     # dense store


def pallas_slide_attention(qkv4, w1_eff, kbias, vbias, *, H, W, ka,
                           out_dtype=jnp.bfloat16):
    """qkv4: (B*nh, 3, cph, HW) head-major.  Returns (B*nh, cph, HW)."""
    bn, _, cph, hw = qkv4.shape
    nh = kbias.shape[0]
    B = bn // nh
    ka2 = ka * ka
    kernel = functools.partial(_slide_attn_kernel, H=H, W=W, ka=ka)
    return pl.pallas_call(
        kernel,
        out_shape=jax.ShapeDtypeStruct((bn, cph, hw), out_dtype),
        grid=(B, nh),
        in_specs=[
            pl.BlockSpec((1, 3, cph, hw), lambda b, h: (b * nh + h, 0, 0, 0)),
            pl.BlockSpec((cph, ka2 * ka2), lambda b, h: (0, 0)),
            pl.BlockSpec((1, ka2, cph, 1), lambda b, h: (h, 0, 0, 0)),
            pl.BlockSpec((ka2, cph, 1), lambda b, h: (0, 0, 0)),
        ],
        out_specs=pl.BlockSpec((1, cph, hw), lambda b, h: (b * nh + h, 0, 0)),
        compiler_params=pltpu.CompilerParams(
            dimension_semantics=("parallel", "parallel")),
    )(qkv4, w1_eff, kbias, vbias)


# ---------------------------------------------------------------------------
# Parameters & forward (glue is only parameter prep and free reshapes)
# ---------------------------------------------------------------------------
def init_params(key, dim, num_heads, ka, dim_reduction):
    nh, dr = num_heads, dim_reduction
    cph = dim // dr // nh
    ka2 = ka * ka
    ks = jax.random.split(key, 8)
    return {
        "w_qkv": 0.05 * jax.random.normal(ks[0], (dim, 3 * dim // dr), jnp.float32),
        "b_qkv": 0.05 * jax.random.normal(ks[1], (3 * dim // dr,), jnp.float32),
        "w_proj": 0.05 * jax.random.normal(ks[2], (dim // dr, dim), jnp.float32),
        "b_proj": 0.05 * jax.random.normal(ks[3], (dim,), jnp.float32),
        # dep_conv weight is the fixed identity-shift kernel (fused into the
        # in-VMEM tap construction); only its bias is a free parameter.
        "b_dep": 0.05 * jax.random.normal(ks[4], (cph * ka2,), jnp.float32),
        # dep_conv1 depthwise weight (cph*ka2, 1, ka, ka) -> (cph, ka2, ka2)
        "w_dep1": 0.05 * jax.random.normal(ks[5], (cph, ka2, ka2), jnp.float32),
        "b_dep1": 0.05 * jax.random.normal(ks[6], (cph * ka2,), jnp.float32),
        # relative_position_bias_table (1, nh, 1, ka*ka, 1, 1) -> (nh, ka*ka)
        "rpb": 0.02 * jax.random.normal(ks[7], (nh, ka2), jnp.float32),
    }


def slide_attention_forward(x, params, *, num_heads, ka, dim_reduction):
    B, C, H, W = x.shape
    nh, dr = num_heads, dim_reduction
    cph = C // dr // nh
    ka2 = ka * ka
    hw = H * W
    scale = (C // nh) ** -0.5

    # ---- parameter prep (tiny, once per call) ----
    # Fold the q scaling into the q rows of the qkv weight / bias, and emit
    # the (already freshly created) GEMM weights directly in bf16.
    f_idx = jnp.arange(3 * C // dr)
    scale_vec = jnp.where((f_idx % (3 * cph)) < cph, scale, 1.0).astype(jnp.float32)
    w_qkv_t = (params["w_qkv"].T * scale_vec[:, None]).astype(jnp.bfloat16)  # (3C/dr, C)
    b_qkv = params["b_qkv"] * scale_vec
    w_proj_t = params["w_proj"].T.astype(jnp.bfloat16)                       # (C, C/dr)

    # Effective per-channel tap-mix weight: identity dep_conv + dep_conv1.
    w1_eff = (params["w_dep1"] +
              jnp.eye(ka2, dtype=jnp.float32)[None]).reshape(cph, ka2 * ka2)

    dep_bias = (params["b_dep"] + params["b_dep1"]).reshape(cph, ka2)        # [c, t]
    kbias = dep_bias.T[None, :, :, None] + params["rpb"][:, :, None, None]   # (nh,ka2,cph,1)
    vbias = dep_bias.T[:, :, None]                                           # (ka2,cph,1)

    # ---- Pallas pipeline (channels-first everywhere; no transposes) ----
    x3 = x.reshape(B, C, hw)                                          # f32; cast in-kernel
    qkv = pallas_cf_linear(x3, w_qkv_t, b_qkv, out_dtype=jnp.bfloat16)  # (B, 3C/dr, hw)
    qkv4 = qkv.reshape(B * nh, 3, cph, hw)                            # free reshape

    attn = pallas_slide_attention(qkv4, w1_eff, kbias, vbias, H=H, W=W, ka=ka,
                                  out_dtype=jnp.bfloat16)             # (B*nh, cph, hw)
    attn3 = attn.reshape(B, C // dr, hw)                              # free reshape

    out = pallas_cf_linear(attn3, w_proj_t, params["b_proj"],
                           out_dtype=jnp.float32)                     # (B, C, hw)
    # attn_drop / proj_drop have p=0.0 (identity); module returns (x, None, None).
    return out.reshape(B, C, H, W)


# ---------------------------------------------------------------------------
# Pure-JAX f32 reference for correctness checking
# ---------------------------------------------------------------------------
def _extract_patches(x, ka):
    """x: (B, nh, cph, H, W) -> (B, nh, cph, ka*ka, H, W) zero-padded shifts."""
    pad = ka // 2
    H, W = x.shape[-2], x.shape[-1]
    xp = jnp.pad(x, ((0, 0), (0, 0), (0, 0), (pad, pad), (pad, pad)))
    pats = []
    for dy in range(ka):
        for dx in range(ka):
            pats.append(xp[..., dy:dy + H, dx:dx + W])
    return jnp.stack(pats, axis=3)


def reference_forward(x, params, *, num_heads, ka, dim_reduction):
    B, C, H, W = x.shape
    nh, dr = num_heads, dim_reduction
    cph = C // dr // nh
    scale = (C // nh) ** -0.5

    x_bhwc = jnp.transpose(x, (0, 2, 3, 1))
    qkv = x_bhwc.reshape(B * H * W, C) @ params["w_qkv"] + params["b_qkv"]
    qkv = qkv.reshape(B, H, W, 3 * C // dr)
    f = jnp.transpose(qkv, (0, 3, 1, 2)).reshape(B, nh, 3 * cph, H, W)
    q = (f[:, :, :cph] * scale).reshape(B, nh, cph, 1, H * W)
    k = f[:, :, cph:2 * cph]
    v = f[:, :, 2 * cph:]

    kpat = _extract_patches(k, ka).reshape(B, nh, cph, ka * ka, H * W)
    vpat = _extract_patches(v, ka).reshape(B, nh, cph, ka * ka, H * W)
    dep_bias = (params["b_dep"] + params["b_dep1"]).reshape(cph, ka * ka)

    k_full = (kpat + jnp.einsum("ckj,bncjp->bnckp", params["w_dep1"], kpat)
              + dep_bias[None, None, :, :, None]
              + params["rpb"][None, :, None, :, None])
    v_full = (vpat + jnp.einsum("ckj,bncjp->bnckp", params["w_dep1"], vpat)
              + dep_bias[None, None, :, :, None])
    attn = jnp.sum(q * k_full, axis=2, keepdims=True)
    attn = jax.nn.softmax(attn, axis=3)
    out = jnp.sum(attn * v_full, axis=3)                          # (B, nh, cph, HW)
    out = out.reshape(B, C // dr, H, W)
    out = jnp.transpose(out, (0, 2, 3, 1)).reshape(B * H * W, C // dr)
    out = out @ params["w_proj"] + params["b_proj"]
    out = out.reshape(B, H, W, C)
    return jnp.transpose(out, (0, 3, 1, 2))


if __name__ == "__main__":
    dim, num_heads, ka, dim_reduction = 32, 2, 3, 4
    B, H, W = 2, 16, 16

    key = jax.random.PRNGKey(0)
    k_x, k_p = jax.random.split(key)
    x = jax.random.normal(k_x, (B, dim, H, W), jnp.float32)
    params = init_params(k_p, dim, num_heads, ka, dim_reduction)

    out = slide_attention_forward(x, params, num_heads=num_heads, ka=ka,
                                  dim_reduction=dim_reduction)
    out = jax.block_until_ready(out)

    ref = reference_forward(x, params, num_heads=num_heads, ka=ka,
                            dim_reduction=dim_reduction)
    assert out.shape == (B, dim, H, W)
    max_err = float(jnp.max(jnp.abs(out - ref)))
    # bf16 MXU operands / inter-kernel tensors (f32 accumulation) + approx
    # reciprocal in the softmax -> loosened tolerance vs. the pure-f32 path.
    assert jnp.allclose(out, ref, rtol=2e-2, atol=2e-2), f"max_err={max_err}"
    print("KERNEL_OK")
</pallas_src>

<mosaic_0001>
module attributes {stable_mosaic.version = 11 : i64} {
  func.func @_cf_linear_kernel(%arg0: i32, %arg1: i32, %arg2: memref<1x32x256xf32, #tpu.memory_space<vmem>>, %arg3: memref<24x32xbf16, #tpu.memory_space<vmem>>, %arg4: memref<24x1xf32, #tpu.memory_space<vmem>>, %arg5: memref<1x24x256xbf16, #tpu.memory_space<vmem>>) attributes {dimension_semantics = [#tpu.dimension_semantics<parallel>, #tpu.dimension_semantics<parallel>], iteration_bounds = array<i64: 2, 1>, scalar_prefetch = 0 : i64, scratch_operands = 0 : i64, tpu.core_type = #tpu.core_type<tc>, window_params = [{transform_indices = @transform_0, window_bounds = array<i64: 1, 32, 256>}, {pipeline_mode = #tpu.pipeline_mode<synchronous>, transform_indices = @transform_1, window_bounds = array<i64: 24, 32>}, {pipeline_mode = #tpu.pipeline_mode<synchronous>, transform_indices = @transform_2, window_bounds = array<i64: 24, 1>}, {transform_indices = @transform_3, window_bounds = array<i64: 1, 24, 256>}]} {
    %c0 = arith.constant 0 : index
    %c0_0 = arith.constant 0 : index
    %c0_1 = arith.constant 0 : index
    %0 = vector.load %arg2[%c0, %c0_0, %c0_1] : memref<1x32x256xf32, #tpu.memory_space<vmem>>, vector<1x32x256xf32>
    %1 = vector.shape_cast %0 : vector<1x32x256xf32> to vector<32x256xf32>
    %2 = arith.truncf %1 : vector<32x256xf32> to vector<32x256xbf16>
    %c0_2 = arith.constant 0 : index
    %c0_3 = arith.constant 0 : index
    %3 = vector.load %arg3[%c0_2, %c0_3] : memref<24x32xbf16, #tpu.memory_space<vmem>>, vector<24x32xbf16>
    %cst = arith.constant dense<0.000000e+00> : vector<24x256xf32>
    %4 = tpu.matmul %3, %2, %cst {dimension_numbers = #tpu.dot_dimension_numbers<[1], [0], [0], [1], [0, 0, 1, 1], [], []>} : vector<24x32xbf16>, vector<32x256xbf16>, vector<24x256xf32> -> vector<24x256xf32>
    %c0_4 = arith.constant 0 : index
    %c0_5 = arith.constant 0 : index
    %5 = vector.load %arg4[%c0_4, %c0_5] : memref<24x1xf32, #tpu.memory_space<vmem>>, vector<24x1xf32>
    %6 = vector.broadcast %5 : vector<24x1xf32> to vector<24x256xf32>
    %7 = arith.addf %4, %6 : vector<24x256xf32>
    %8 = arith.truncf %7 : vector<24x256xf32> to vector<24x256xbf16>
    %c0_6 = arith.constant 0 : index
    %c0_7 = arith.constant 0 : index
    %c0_8 = arith.constant 0 : index
    %9 = vector.load %arg5[%c0_6, %c0_7, %c0_8] : memref<1x24x256xbf16, #tpu.memory_space<vmem>>, vector<1x24x256xbf16>
    %10 = vector.shape_cast %9 : vector<1x24x256xbf16> to vector<24x256xbf16>
    %11 = vector.shape_cast %8 : vector<24x256xbf16> to vector<1x24x256xbf16>
    tpu.vector_store %arg5[%c0_6, %c0_7, %c0_8], %11 {strides = array<i32>} : memref<1x24x256xbf16, #tpu.memory_space<vmem>>, vector<1x24x256xbf16>,
    return
  }
  func.func @transform_0(%arg0: i32, %arg1: i32) -> (i32, i32, i32) {
    %c0_i32 = arith.constant 0 : i32
    %c0_i32_0 = arith.constant 0 : i32
    return %arg0, %c0_i32, %arg1 : i32, i32, i32
  }
  func.func @transform_1(%arg0: i32, %arg1: i32) -> (i32, i32) {
    %c0_i32 = arith.constant 0 : i32
    %c0_i32_0 = arith.constant 0 : i32
    %c0_i32_1 = arith.constant 0 : i32
    return %c0_i32, %c0_i32_0 : i32, i32
  }
  func.func @transform_2(%arg0: i32, %arg1: i32) -> (i32, i32) {
    %c0_i32 = arith.constant 0 : i32
    %c0_i32_0 = arith.constant 0 : i32
    %c0_i32_1 = arith.constant 0 : i32
    return %c0_i32, %c0_i32_0 : i32, i32
  }
  func.func @transform_3(%arg0: i32, %arg1: i32) -> (i32, i32, i32) {
    %c0_i32 = arith.constant 0 : i32
    %c0_i32_0 = arith.constant 0 : i32
    return %arg0, %c0_i32, %arg1 : i32, i32, i32
  }
}

</mosaic_0001>

<bundles_post_ra>
// kernel: tpu_custom_call.1
= control target key start
LH: loop header
LB: loop body
LE: loop exit
PB: predicated region body
PF: predicated region fallthrough
CT: control target
= control target key end

     0   :  { %8 = vsyncpa [#allocation3], 0  ;;  %s779_s0 = inlined_call_operand.hbm [shape: f32[2,32,256], index: 0, kind: input, shape index: {}]   ;;  %s780_s1 = inlined_call_operand.vmem [shape: bf16[24,32], index: 1, kind: input, shape index: {}]   ;;  %s781_s2 = inlined_call_operand.vmem [shape: f32[24,1], index: 2, kind: input, shape index: {}]   ;;  %s782_s3 = inlined_call_operand.hbm [shape: bf16[2,24,256], index: 3, kind: output, shape index: {}]  }
   0x1   :  { %10 = vsyncpa [#allocation3 + $0x1], 0 }
   0x2   :  { %11 = vsyncpa [#allocation4], 0 }
   0x3   :  { %13 = vsyncpa [#allocation4 + $0x1], 0  ;;  %s643_s12 = smov 0   ;;  %s645_s13 = smov 0  }
   0x4   :  { %s647_s14 = smov 0   ;;  %s649_s15 = smov 0  }
   0x5   :  { %s651_s16 = smov 0   ;;  %s653_s17 = smov 0  }
   0x6 LB: > { %s407_s18 = sadd.s32 4294967295, %s616_s17   ;;  %s408_s19 = sadd.s32 4294967294, %s616_s17   ;;  %s616_s17 = sphi %s653_s17, %s19_s17   ;;  %s612_s16 = sphi %s651_s16, %s791_s16   ;;  %s608_s15 = sphi %s649_s15, %s790_s15   ;;  %s604_s14 = sphi %s647_s14, %s789_s14   ;;  %s600_s13 = sphi %s645_s13, %s788_s13   ;;  %s596_s12 = sphi %s643_s12, %s787_s12  }
   0x7   : > { %s31_s20 = sadd.s32 1, %s612_s16  ;;  %s40_s21 = sadd.s32 1, %s604_s14 }
   0x8   : > { %p33_p0 = scmp.ge.s32.totalorder %s31_s20, 2  ;;  %p47_p1 = scmp.ne.s32.totalorder %s604_s14, %s600_s13 }
   0x9   : > { %p48_p2 = scmp.eq.s32.totalorder %s616_s17, 0  ;;  %p53_p3 = scmp.ne.s32.totalorder %s600_s13, %s596_s12 }
   0xa   : > { %s793_s20 = smov (%p33_p0, %s31_s20), 0  ;;  %p54_p5 = scmp.eq.s32.totalorder %s407_s18, 0 }
   0xb   : > { %p684_p4 = por %p48_p2, %p47_p1  ;;  %s35_s23 = ssub.s32 %s612_s16, %s793_s20 }
   0xc   : > { %p121_p6 = scmp.eq.s32.totalorder %s407_s18, 1  ;;  %p38_p7 = scmp.eq.s32.totalorder %s35_s23, 0 }
   0xd   : > { %p690_p8 = por %p54_p5, %p53_p3  ;;  %p127_p10 = scmp.eq.s32.totalorder %s408_s19, 1 }
   0xe   : > { %p694_p9 = por %p121_p6, %p47_p1  ;;  %p410_p12 = scmp.ge.s32.totalorder %s616_s17, 2 }
   0xf   : > { %s699_s26 = scalar_select %p38_p7, %s604_s14, %s40_s21  }
  0x10   : > { %p701_p11 = por %p127_p10, %p53_p3  ;;  %p447_p13 = scmp.lt.s32.totalorder %s616_s17, 2 }
  0x11   : > { %s153_s28 = sand.u32 1, %s604_s14   ;;  %s427_s30 = sshll.u32 %s612_s16, 6 }
  0x12   : > { %s411_s29 = sshll.u32 %s153_s28, 6  ;;  %s164_s6 = scalar_lea.hbm %s779_s0, %s427_s30 }
  0x13   : > { %s157_s7 = scalar_lea.vmem [#allocation2], %s411_s29  ;;  %s165_s9 = sshll.u32 %s164_s6, 4  ;;  %s166_s9 = int_to_ptr.hbm [resolvable:$true] %s165_s9 }
  0x14   : > { %s167_s8 = sshll.u32 %s157_s7, 4  ;;  %p440_p0 = pnand %p447_p13, %p684_p4  ;;  %s168_s8 = int_to_ptr.vmem [resolvable:$true] %s167_s8 }
  0x15   : > { %p414_p1 = scmp.ge.s32.totalorder %s616_s17, 1  ;;  %s154_s10 = scalar_lea.sflag [#allocation3], %s153_s28 }
  0x16   : > { %s618_s11 = smov 256   ;;  %s619_s18 = smov 16  }
  0x17   : > { %442 = dma.hbm_to_vmem [thread:$0]  (!%p440_p0), %s166_s9, 1024, %s168_s8, %s154_s10, %s618_s11, %s618_s11, %s619_s18  }
  0x18   : > { %p175_p2 = scmp.lt.s32.totalorder %s616_s17, 3 }
  0x1a   : > { %p176_p3 = pnand %p414_p1, %p175_p2 }
  0x1b   : > { %s717_s19 = sand.u32 (!%p176_p3), 1, %s600_s13  }
  0x1c   : > { %179 = sbr.rel (%p176_p3) target bundleno = 188 (0xbc), region = 32  ;;  %s415_s21 = sshll.u32 (!%p176_p3), %s717_s19, 6 }
  0x1d   : > { %s182_s23 = scalar_lea.sflag (!%p176_p3), [#allocation3], %s717_s19  ;;  %s185_s29 = scalar_lea.vmem (!%p176_p3), [#allocation2], %s415_s21 }
  0x21   : > { %587 = dma.done.wait (%p690_p8), %s182_s23, 1024  }
  0x22   : > { %589 = vsyncadd (%p690_p8), %s182_s23, 4294966272  ;;  %v620_v0 = vmov 0   ;;  %v216_v1 = vld [vmem:[%s185_s29 + $0x20] sm:$0xff]  ;;  %v218_v2 = vld [vmem:[%s185_s29 + $0x30] sm:$0xff]  ;;  %vm253_vm0 = vcmask 261120   ;;  %s433_s10 = smul.u32 24, %s717_s19 }
  0x23   : > { %502 = vset.pattern.permute.xlu0 %v620_v0  ;;  %503 = vset.pattern.permute.xlu1 %v620_v0  ;;  %v217_v3 = vld [vmem:[%s185_s29 + $0x28] sm:$0xff]  ;;  %v222_v4 = vpack.c.bf16 %v218_v2, %v216_v1  ;;  %v219_v5 = vld [vmem:[%s185_s29 + $0x38] sm:$0xff]  ;;  %v212_v6 = vld [vmem:[%s185_s29] sm:$0xff]  ;;  %s434_s11 = smul.u32 24, %s608_s15  ;;  %s303_s15 = scalar_lea.sflag [#allocation4], %s717_s19 }
  0x24   : > { %v214_v7 = vld [vmem:[%s185_s29 + $0x10] sm:$0xff]  ;;  %v223_v8 = vpack.c.bf16 %v219_v5, %v217_v3  ;;  %v213_v9 = vld [vmem:[%s185_s29 + $0x8] sm:$0xff]  ;;  %v215_v10 = vld [vmem:[%s185_s29 + $0x18] sm:$0xff]  ;;  %s208_s29 = scalar_lea.vmem [#allocation5], %s433_s10  ;;  %s554_s6 = scalar_lea.hbm %s782_s3, 48 }
  0x25   : > { %266 = vmatpush.bf16.msra.mxu0 %v222_v4  ;;  %429 = vmatpush.bf16.msra.mxu2 %v222_v4  ;;  %v220_v11 = vpack.c.bf16 %v214_v7, %v212_v6  ;;  %v226_v12 = vld [vmem:[%s780_s1 + $0x8] sm:$0xf]  ;;  %v227_v13 = vld [vmem:[%s781_s2] sm:$0xff]  ;;  %v221_v14 = vpack.c.bf16 %v215_v10, %v213_v9  ;;  %v229_v16 = vld [vmem:[%s781_s2 + $0x10] sm:$0xff]  ;;  %s316_s23 = scalar_lea.hbm %s782_s3, %s434_s11  ;;  %s317_s22 = sshll.u32 %s208_s29, 4  ;;  %s318_s22 = int_to_ptr.vmem [resolvable:$true] %s317_s22 }
  0x26   : > { %284 = vmatpush.bf16.msra.mxu1 %v223_v8  ;;  %431 = vmatpush.bf16.msra.mxu3 %v223_v8  ;;  %v250_v15 = vunpack.c.l.b16 %v226_v12  ;;  %v428_v17 = vld [vmem:[%s780_s1] sm:$0xff]  ;;  %v228_v19 = vld [vmem:[%s781_s2 + $0x8] sm:$0xff]  ;;  %s319_s28 = sshll.u32 %s316_s23, 4  ;;  %s320_s28 = int_to_ptr.hbm [resolvable:$true] %s319_s28 }
  0x27   : > { %232 = vperm.xlu0 %502, %v227_v13   ;;  %242 = vperm.xlu1 %503, %v229_v16   ;;  %s548_s24 = sshra.s32 %s320_s28, 4  ;;  %s549_s24 = int_to_ptr.hbm [resolvable:$true] %s548_s24 }
  0x28   : > { %v252_v18 = vpack.c.b16 %v250_v15, %v250_v15  ;;  %s550_s30 = scalar_lea.hbm %s549_s24, 24  ;;  %p555_p7 = scmp.lt.s32.totalorder %s549_s24, %s782_s3 }
  0x29   : > { %267 = vmatpush.bf16.msra.mxu0 %v220_v11  ;;  %430 = vmatpush.bf16.msra.mxu2 %v220_v11  ;;  %p551_p4 = scmp.ne.s32.totalorder %s549_s24, %s550_s30  ;;  %p556_p8 = scmp.lt.s32.totalorder %s554_s6, %s550_s30 }
  0x2a   : > { %285 = vmatpush.bf16.msra.mxu1 %v221_v14  ;;  %432 = vmatpush.bf16.msra.mxu3 %v221_v14 }
  0x2b   : > { %p552_p5 = pnand %p551_p4, %p694_p9  ;;  %p557_p10 = por %p556_p8, %p555_p7 }
  0x2c   : > { %420 = vmatmul.msk.bf16.vlgmr.msra.gmra.mxu0 %vm253_vm0, %v428_v17  ;;  %421 = vmatmul.msk.bf16.vlgmr.msra.gmra.mxu2 %vm253_vm0, %v252_v18 }
  0x2d   : > { %422 = vmatmul.msk.bf16.vlgmr.msra.gmra.mxu1 %vm253_vm0, %v428_v17  ;;  %423 = vmatmul.msk.bf16.vlgmr.msra.gmra.mxu3 %vm253_vm0, %v252_v18  ;;  %p553_p6 = pneg %p552_p5 }
  0x2f   : > { %237 = vperm.xlu0 %502, %v228_v19   ;;  %p558_p13 = pnand %p557_p10, %p553_p6 }
  0x99   : > { %v233_v20 = vpop.permute.xlu0 %232  ;;  %v243_v26 = vpop.permute.xlu1 %242 }
  0xa1   : > { %v238_v30 = vpop.permute.xlu0 %237 }
  0xa9   : > { %v269_v21 = vpop.f32.mrf.mxu0 }
  0xaa   : > { %v270_v22 = vadd.f32 %v269_v21, %v233_v20  ;;  %v287_v23 = vpop.f32.mrf.mxu1 }
  0xab   : > { %v288_v24 = vadd.f32 %v287_v23, %v233_v20 }
  0xad   : > { %v296_v25 = vpack.c.bf16 %v288_v24, %v270_v22 }
  0xaf   : > { %299 = vst [vmem:[%s208_s29] sm:$0xff] %v296_v25  ;;  %v274_v27 = vpop.f32.mrf.mxu2 }
  0xb0   : > { %v275_v28 = vadd.f32 %v274_v27, %v243_v26  ;;  %v292_v29 = vpop.f32.mrf.mxu3 }
  0xb1   : > { %v293_v31 = vadd.f32 %v292_v29, %v243_v26  ;;  %v271_v32 = vpop.f32.mrf.mxu0 }
  0xb2   : > { %v272_v33 = vadd.f32 %v271_v32, %v238_v30  ;;  %v289_v34 = vpop.f32.mrf.mxu1 }
  0xb3   : > { %v298_v35 = vpack.c.bf16 %v293_v31, %v275_v28  ;;  %v290_v36 = vadd.f32 %v289_v34, %v238_v30 }
  0xb5   : > { %301 = vst [vmem:[%s208_s29 + $0x10] sm:$0xff] %v298_v35  ;;  %v297_v37 = vpack.c.bf16 %v290_v36, %v272_v33 }
  0xb7   : > { %300 = vst [vmem:[%s208_s29 + $0x8] sm:$0xff] %v297_v37  ;;  %v276_v38 = vpop.f32.mrf.mxu2 }
  0xb8   : > { %v294_v39 = vpop.f32.mrf.mxu3 }
  0xb9   : > { %561 = shalt.err (!%p558_p13)
}
  0xba   : > { %s621_s19 = smov 128   ;;  %s622_s9 = smov 8  }
  0xbb   : > { %437 = dma.vmem_to_hbm [thread:$0]  (%p694_p9), %s318_s22, 384, %s320_s28, %s303_s15, %s621_s19, %s621_s19, %s622_s9  }
  0xbc PF: > { %s334_s10 = sand.u32 1, %s596_s12   ;;  %p444_p0 = pnand %p410_p12, %p701_p11 }
  0xbd   : > { %s335_s11 = scalar_lea.sflag [#allocation4], %s334_s10 }
  0xbe   : > { %p445_p1 = pneg %p444_p0 }
  0xc0   : > { %591 = dma.done.wait (%p445_p1), %s335_s11, 384  }
  0xc1   : > { %593 = vsyncadd (%p445_p1), %s335_s11, 4294966912  ;;  %s19_s17 = sadd.s32 1, %s616_s17   ;;  %s787_s12 = smov %s600_s13 }
  0xc2   : > { %p16_p2 = scmp.ge.s32.totalorder %s19_s17, 4   ;;  %s788_s13 = smov %s604_s14 }
  0xc3   : > { %s789_s14 = smov %s699_s26  ;;  %s790_s15 = smov %s612_s16 }
  0xc4   : > { %s791_s16 = smov %s793_s20  ;;  %18 = sbr.rel (!%p16_p2) target bundleno = 6 (0x6), region = 77 }
  0xc9   :  { %341 = vsyncpa [#allocation3], 1 }
  0xca   :  { %343 = vsyncpa [#allocation3 + $0x1], 1 }
  0xcb   :  { %344 = vsyncpa [#allocation4], 1 }
  0xcc   :  { %346 = vsyncpa [#allocation4 + $0x1], 1 }

</bundles_post_ra>
